<compile_context>
chip_gen: v7x
topology: tpu7x:2x2x1
jax: 0.10.0
libtpu: 0.0.40
codegen_flags: <defaults>
</compile_context>

<pallas_src>
import functools
import math

import jax
import jax.numpy as jnp
from jax.experimental import pallas as pl
from jax.experimental.pallas import tpu as pltpu

_VMEM_LIMIT_BYTES = 32 * 1024 * 1024    # > v5e default scoped 16 MiB, < v7x physical 64 MiB
_BLOCK_BUDGET_BYTES = 4 * 1024 * 1024   # per x/out block; (in+out) x double-buffer = 16 MiB


def _sublane_multiple(itemsize):
    return {4: 8, 2: 16, 1: 32}.get(int(itemsize), 8)


def _round_up(a, m):
    return ((a + m - 1) // m) * m


def _largest_divisor_leq(n, cap):
    cap = max(1, min(n, cap))
    for d in range(cap, 0, -1):
        if n % d == 0:
            return d
    return 1


def _pick_s_tile(S, cap, sub):
    """Largest sublane-aligned divisor of S that is <= cap, else S (full)."""
    if S <= cap:
        return S
    d = (cap // sub) * sub
    while d >= sub:
        if S % d == 0:
            return d
        d -= sub
    return S   # no aligned divisor fits; full extent is always a legal block


def _pick_tiles(K, n_out, S, D, dtype, block_k, block_s):
    """Choose (tk, ts): K-tile and S-tile sizes (both exact divisors)."""
    itemsize = dtype.itemsize
    sub = _sublane_multiple(itemsize)
    lane_d = _round_up(D, 128)   # lane padding in VMEM

    if block_s is not None and S % block_s == 0 and \
            (block_s == S or block_s % sub == 0):
        ts = block_s
    else:
        row_cap = max(sub, _BLOCK_BUDGET_BYTES // (lane_d * itemsize))
        ts = _pick_s_tile(S, row_cap, sub)

    if block_k is not None:
        tk = _largest_divisor_leq(K, block_k)
    else:
        bytes_per_k = _round_up(ts, sub) * lane_d * itemsize
        tk_cap = max(1, _BLOCK_BUDGET_BYTES // bytes_per_k)
        # v7x has 2 TensorCores; keep >= 2 parallel grid steps when possible.
        if n_out * (S // ts) == 1 and K >= 2:
            tk_cap = min(tk_cap, K // 2)
        tk = _largest_divisor_leq(K, tk_cap)
    return tk, ts


def _dirnet_kernel(x_ref, wt_ref, b_ref, o_ref, *, n_indx, block_s):
    # x_ref : (tk, 1, ts, D)  native-layout slab x[k_tile, i, s_tile, :]
    # wt_ref: (D, D)          (W_i * scale).T
    # b_ref : (1, D)          b_i * lr_mul
    x = x_ref[...]                                       # (tk, 1, ts, D)
    tk = x.shape[0]
    d = x.shape[-1]
    # 2D matmul on the MXU (leading dims merged into M; ts is sublane-aligned
    # whenever the wrapper tiled S, so the reshape is a layout no-op).
    y = jnp.dot(x.reshape(tk * block_s, d), wt_ref[...],
                preferred_element_type=jnp.float32)
    y = y.reshape(x.shape) + b_ref[...]                  # bias broadcasts over rows

    # Static row-selection mask: unrolled equality compares (VPU only).
    rows = (jax.lax.broadcasted_iota(jnp.int32, (block_s, 1), 0)
            + pl.program_id(2) * block_s)
    sel = rows == n_indx[0]
    for j in n_indx[1:]:
        sel = jnp.logical_or(sel, rows == j)

    # Selected rows take the linear-layer output, everything else passes through.
    o_ref[...] = jnp.where(sel, y.astype(o_ref.dtype), x)


@functools.partial(jax.jit,
                   static_argnames=("n_indx", "lr_mul", "block_k", "block_s"))
def dirnet_forward(x, weights, biases, n_indx, *, lr_mul=1.0,
                   block_k=None, block_s=None):
    """DirNet forward.

    x: (K, n_out, S, D) or (n_out, S, D); weights: (n_out, D, D) in PyTorch
    layout (out, in); biases: (n_out, D).  in_dim == out_dim == D."""
    n_indx = tuple(int(j) for j in n_indx)

    squeeze_batch = (x.ndim == 3)
    if squeeze_batch:
        x = x[None]
    if x.ndim != 4:
        raise NotImplementedError("DirNet forward expects 3D or 4D input")
    K, n_out, S, D = x.shape
    if weights.shape != (n_out, D, D):
        raise ValueError(f"weights must be (n_out, D, D)={(n_out, D, D)}, "
                         f"got {weights.shape}")
    if biases.shape != (n_out, D):
        raise ValueError(f"biases must be (n_out, D)={(n_out, D)}, "
                         f"got {biases.shape}")

    # Normalize / validate row indices (PyTorch would raise on out-of-range).
    norm = []
    for j in n_indx:
        jj = j + S if j < 0 else j
        if not 0 <= jj < S:
            raise IndexError(f"n_indx entry {j} out of range for S={S}")
        norm.append(jj)
    n_indx = tuple(sorted(set(norm)))

    if not n_indx:                      # nothing selected -> pure clone
        out = x
    else:
        scale = lr_mul / math.sqrt(D)
        # y = x @ (W*scale).T + b*lr_mul ; pre-scale / pre-transpose the tiny
        # weights once (negligible HBM traffic vs. the activations).
        # NOTE: weights are cast to x.dtype for the MXU; with bf16 activations
        # this drops weight precision vs. the f32 PyTorch path (acc stays f32).
        wt = jnp.transpose(weights.astype(jnp.float32) * scale,
                           (0, 2, 1)).astype(x.dtype)            # (n_out, D, D)
        b = (biases.astype(jnp.float32) * lr_mul).reshape(n_out, 1, D)

        tk, ts = _pick_tiles(K, n_out, S, D, x.dtype, block_k, block_s)
        grid = (n_out, K // tk, S // ts)

        cost = pl.CostEstimate(
            flops=2 * K * n_out * S * D * D,
            transcendentals=0,
            bytes_accessed=int(2 * x.size * x.dtype.itemsize
                               + wt.size * wt.dtype.itemsize
                               + b.size * b.dtype.itemsize))

        kernel = functools.partial(_dirnet_kernel, n_indx=n_indx, block_s=ts)

        # TODO(synk): when len(n_indx) << S and the caller can donate x, switch
        # to input_output_aliases={0: 0} with single-row, scalar-prefetched
        # output blocks so pass-through rows are never re-read or re-written.
        out = pl.pallas_call(
            kernel,
            out_shape=jax.ShapeDtypeStruct(x.shape, x.dtype),
            grid_spec=pltpu.PrefetchScalarGridSpec(
                num_scalar_prefetch=0,
                grid=grid,
                in_specs=[
                    # Native-layout activation slab; no wrapper transpose.
                    pl.BlockSpec((tk, 1, ts, D),
                                 lambda i, kb, sb: (kb, i, sb, 0)),
                    # Weight / bias block index depends only on the outermost
                    # (layer) axis -> DMA'd once per layer, VMEM-resident after.
                    pl.BlockSpec((pl.Squeezed(), D, D),
                                 lambda i, kb, sb: (i, 0, 0)),
                    pl.BlockSpec((pl.Squeezed(), 1, D),
                                 lambda i, kb, sb: (i, 0, 0)),
                ],
                out_specs=pl.BlockSpec((tk, 1, ts, D),
                                       lambda i, kb, sb: (kb, i, sb, 0)),
            ),
            compiler_params=pltpu.CompilerParams(
                dimension_semantics=("parallel", "parallel", "parallel"),
                vmem_limit_bytes=_VMEM_LIMIT_BYTES),
            cost_estimate=cost,
        )(x, wt, b)

    if squeeze_batch:
        out = out[0]
    return out


def dirnet_reference(x, weights, biases, n_indx, *, lr_mul=1.0):
    """Pure-JAX reference matching the PyTorch loop semantics."""
    if x.ndim == 3:
        return dirnet_reference(x[None], weights, biases, n_indx,
                                lr_mul=lr_mul)[0]
    K, n_out, S, D = x.shape
    scale = lr_mul / math.sqrt(weights.shape[-1])
    out = x
    for k in range(K):
        for i in range(n_out):
            for j in n_indx:
                y = x[k, i, j, :] @ (weights[i] * scale).T + biases[i] * lr_mul
                out = out.at[k, i, j, :].set(y)
    return out


if __name__ == "__main__":
    # Shapes consistent with DirNet's forward:
    # K (batch) = 2, n_out = 4 layers, S = 8 style rows, in_dim = out_dim = 32.
    K, n_out, S, D = 2, 4, 8, 32
    n_indx = (1, 3, 5)
    lr_mul = 1.0

    key = jax.random.PRNGKey(0)
    kx, kw, kb, kx2 = jax.random.split(key, 4)
    x = jax.random.normal(kx, (K, n_out, S, D), dtype=jnp.float32)
    # init='identity': identity + small perturbation so the matmul is exercised.
    weights = (jnp.eye(D, dtype=jnp.float32)[None]
               + 0.01 * jax.random.normal(kw, (n_out, D, D), jnp.float32))
    biases = 0.1 * jax.random.normal(kb, (n_out, D), jnp.float32)

    # Default (auto-tiled) native-layout path.
    ref = dirnet_reference(x, weights, biases, n_indx, lr_mul=lr_mul)
    out = jax.block_until_ready(
        dirnet_forward(x, weights, biases, n_indx, lr_mul=lr_mul))
    assert out.shape == x.shape and out.dtype == x.dtype
    assert jnp.allclose(out, ref, atol=1e-5, rtol=1e-5), "4D path mismatch"

    # Multi-tile path: K and S both tiled (exercises the K-tile index_map and
    # the S-tile row offset in the mask; selected row 9 lives in the 2nd tile).
    K2, S2, n_indx2 = 4, 16, (1, 3, 9)
    x2 = jax.random.normal(kx2, (K2, n_out, S2, D), dtype=jnp.float32)
    ref2 = dirnet_reference(x2, weights, biases, n_indx2, lr_mul=lr_mul)
    out2 = jax.block_until_ready(
        dirnet_forward(x2, weights, biases, n_indx2, lr_mul=lr_mul,
                       block_k=2, block_s=8))
    assert jnp.allclose(out2, ref2, atol=1e-5, rtol=1e-5), "tiled path mismatch"

    # 3D input path.
    out3 = jax.block_until_ready(
        dirnet_forward(x[0], weights, biases, n_indx, lr_mul=lr_mul))
    assert jnp.allclose(out3, ref[0], atol=1e-5, rtol=1e-5), "3D path mismatch"

    # Empty selection -> pure clone.
    out0 = jax.block_until_ready(
        dirnet_forward(x, weights, biases, (), lr_mul=lr_mul))
    assert jnp.allclose(out0, x), "empty n_indx mismatch"

    print("KERNEL_OK")
</pallas_src>

<mosaic_0001>
module attributes {stable_mosaic.version = 11 : i64} {
  func.func @_dirnet_kernel(%arg0: i32, %arg1: i32, %arg2: i32, %arg3: memref<2x1x8x32xf32, #tpu.memory_space<vmem>>, %arg4: memref<1x32x32xf32, #tpu.memory_space<vmem>>, %arg5: memref<1x1x32xf32, #tpu.memory_space<vmem>>, %arg6: memref<2x1x8x32xf32, #tpu.memory_space<vmem>>) attributes {dimension_semantics = [#tpu.dimension_semantics<parallel>, #tpu.dimension_semantics<parallel>, #tpu.dimension_semantics<parallel>], iteration_bounds = array<i64: 4, 1, 1>, scalar_prefetch = 0 : i64, scratch_operands = 0 : i64, tpu.core_type = #tpu.core_type<tc>, window_params = [{transform_indices = @transform_0, window_bounds = array<i64: 2, 1, 8, 32>}, {transform_indices = @transform_1, window_bounds = array<i64: 1, 32, 32>}, {transform_indices = @transform_2, window_bounds = array<i64: 1, 1, 32>}, {transform_indices = @transform_3, window_bounds = array<i64: 2, 1, 8, 32>}]} {
    %c0 = arith.constant 0 : index
    %c0_0 = arith.constant 0 : index
    %c0_1 = arith.constant 0 : index
    %c0_2 = arith.constant 0 : index
    %0 = vector.load %arg3[%c0, %c0_0, %c0_1, %c0_2] : memref<2x1x8x32xf32, #tpu.memory_space<vmem>>, vector<2x1x8x32xf32>
    %1 = vector.shape_cast %0 : vector<2x1x8x32xf32> to vector<16x32xf32>
    %c0_3 = arith.constant 0 : index
    %c0_4 = arith.constant 0 : index
    %c0_5 = arith.constant 0 : index
    %2 = vector.load %arg4[%c0_3, %c0_4, %c0_5] : memref<1x32x32xf32, #tpu.memory_space<vmem>>, vector<1x32x32xf32>
    %3 = vector.shape_cast %2 : vector<1x32x32xf32> to vector<32x32xf32>
    %cst = arith.constant dense<0.000000e+00> : vector<16x32xf32>
    %4 = tpu.matmul %1, %3, %cst {dimension_numbers = #tpu.dot_dimension_numbers<[1], [0], [0], [1], [0, 0, 1, 1], [], []>} : vector<16x32xf32>, vector<32x32xf32>, vector<16x32xf32> -> vector<16x32xf32>
    %5 = vector.shape_cast %4 : vector<16x32xf32> to vector<2x1x8x32xf32>
    %c0_6 = arith.constant 0 : index
    %c0_7 = arith.constant 0 : index
    %c0_8 = arith.constant 0 : index
    %6 = vector.load %arg5[%c0_6, %c0_7, %c0_8] : memref<1x1x32xf32, #tpu.memory_space<vmem>>, vector<1x1x32xf32>
    %7 = vector.shape_cast %6 : vector<1x1x32xf32> to vector<1x32xf32>
    %8 = vector.shape_cast %7 : vector<1x32xf32> to vector<1x1x1x32xf32>
    %9 = vector.broadcast %8 : vector<1x1x1x32xf32> to vector<2x1x8x32xf32>
    %10 = arith.addf %5, %9 : vector<2x1x8x32xf32>
    %11 = tpu.iota {dimensions = array<i32: 0>} : vector<8x1xi32>
    %c8_i32 = arith.constant 8 : i32
    %12 = arith.muli %arg2, %c8_i32 : i32
    %13 = vector.broadcast %12 : i32 to vector<8x1xi32>
    %14 = arith.addi %11, %13 : vector<8x1xi32>
    %c1_i32 = arith.constant 1 : i32
    %15 = vector.broadcast %c1_i32 : i32 to vector<8x1xi32>
    %16 = arith.cmpi eq, %14, %15 : vector<8x1xi32>
    %c3_i32 = arith.constant 3 : i32
    %17 = vector.broadcast %c3_i32 : i32 to vector<8x1xi32>
    %18 = arith.cmpi eq, %14, %17 : vector<8x1xi32>
    %19 = arith.ori %16, %18 : vector<8x1xi1>
    %c5_i32 = arith.constant 5 : i32
    %20 = vector.broadcast %c5_i32 : i32 to vector<8x1xi32>
    %21 = arith.cmpi eq, %14, %20 : vector<8x1xi32>
    %22 = arith.ori %19, %21 : vector<8x1xi1>
    %23 = vector.shape_cast %22 : vector<8x1xi1> to vector<1x1x8x1xi1>
    %24 = vector.broadcast %23 : vector<1x1x8x1xi1> to vector<2x1x8x32xi1>
    %25 = arith.select %24, %10, %0 : vector<2x1x8x32xi1>, vector<2x1x8x32xf32>
    %c0_9 = arith.constant 0 : index
    %c0_10 = arith.constant 0 : index
    %c0_11 = arith.constant 0 : index
    %c0_12 = arith.constant 0 : index
    %26 = vector.load %arg6[%c0_9, %c0_10, %c0_11, %c0_12] : memref<2x1x8x32xf32, #tpu.memory_space<vmem>>, vector<2x1x8x32xf32>
    tpu.vector_store %arg6[%c0_9, %c0_10, %c0_11, %c0_12], %25 {strides = array<i32>} : memref<2x1x8x32xf32, #tpu.memory_space<vmem>>, vector<2x1x8x32xf32>,
    return
  }
  func.func @transform_0(%arg0: i32, %arg1: i32, %arg2: i32) -> (i32, i32, i32, i32) {
    %c0_i32 = arith.constant 0 : i32
    %c0_i32_0 = arith.constant 0 : i32
    return %arg1, %arg0, %arg2, %c0_i32 : i32, i32, i32, i32
  }
  func.func @transform_1(%arg0: i32, %arg1: i32, %arg2: i32) -> (i32, i32, i32) {
    %c0_i32 = arith.constant 0 : i32
    %c0_i32_0 = arith.constant 0 : i32
    %c0_i32_1 = arith.constant 0 : i32
    return %arg0, %c0_i32, %c0_i32_0 : i32, i32, i32
  }
  func.func @transform_2(%arg0: i32, %arg1: i32, %arg2: i32) -> (i32, i32, i32) {
    %c0_i32 = arith.constant 0 : i32
    %c0_i32_0 = arith.constant 0 : i32
    %c0_i32_1 = arith.constant 0 : i32
    return %arg0, %c0_i32, %c0_i32_0 : i32, i32, i32
  }
  func.func @transform_3(%arg0: i32, %arg1: i32, %arg2: i32) -> (i32, i32, i32, i32) {
    %c0_i32 = arith.constant 0 : i32
    %c0_i32_0 = arith.constant 0 : i32
    return %arg1, %arg0, %arg2, %c0_i32 : i32, i32, i32, i32
  }
}

</mosaic_0001>

<bundles_post_ra>
// kernel: dirnet_forward.1
= control target key start
LH: loop header
LB: loop body
LE: loop exit
PB: predicated region body
PF: predicated region fallthrough
CT: control target
= control target key end

     0   :  { %8 = vsyncpa [#allocation4], 0  ;;  %s849_s0 = inlined_call_operand.vmem [shape: f32[2,4,8,32], index: 0, kind: input, shape index: {}]   ;;  %s850_s1 = inlined_call_operand.vmem [shape: f32[4,32,32], index: 1, kind: input, shape index: {}]   ;;  %s851_s2 = inlined_call_operand.vmem [shape: f32[4,1,32], index: 2, kind: input, shape index: {}]   ;;  %s852_s3 = inlined_call_operand.hbm [shape: f32[2,4,8,32], index: 3, kind: output, shape index: {}]  }
   0x1   :  { %10 = vsyncpa [#allocation4 + $0x1], 0  ;;  %s716_s12 = smov 0   ;;  %s718_s13 = smov 0  }
   0x2   :  { %s720_s14 = smov 0   ;;  %s722_s15 = smov 0  }
   0x3   :  { %s724_s16 = smov 0   ;;  %s726_s17 = smov 0  }
   0x4 LB: > { %s510_s18 = sadd.s32 4294967295, %s690_s17   ;;  %s511_s19 = sadd.s32 4294967294, %s690_s17   ;;  %s690_s17 = sphi %s726_s17, %s16_s17   ;;  %s686_s16 = sphi %s724_s16, %s859_s16   ;;  %s682_s15 = sphi %s722_s15, %s858_s15   ;;  %s678_s14 = sphi %s720_s14, %s857_s14   ;;  %s674_s13 = sphi %s718_s13, %s856_s13   ;;  %s670_s12 = sphi %s716_s12, %s855_s12  }
   0x5   : > { %s35_s20 = sadd.s32 1, %s686_s16  ;;  %s46_s21 = sadd.s32 1, %s678_s14 }
   0x6   : > { %p37_p0 = scmp.ge.s32.totalorder %s35_s20, 4  ;;  %p53_p1 = scmp.ne.s32.totalorder %s678_s14, %s674_s13 }
   0x7   : > { %p54_p2 = scmp.eq.s32.totalorder %s690_s17, 0  ;;  %p139_p3 = scmp.eq.s32.totalorder %s510_s18, 3 }
   0x8   : > { %s861_s20 = smov (%p37_p0, %s35_s20), 0  ;;  %p144_p6 = scmp.ne.s32.totalorder %s674_s13, %s670_s12 }
   0x9   : > { %p55_p4 = por %p54_p2, %p53_p1  ;;  %p755_p5 = por %p139_p3, %p53_p1 }
   0xa   : > { %s40_s23 = ssub.s32 %s686_s16, %s861_s20  ;;  %p145_p8 = scmp.eq.s32.totalorder %s511_s19, 3 }
   0xb   : > { %p44_p7 = scmp.eq.s32.totalorder %s40_s23, 0  ;;  %p513_p10 = scmp.ge.s32.totalorder %s690_s17, 4 }
   0xc   : > { %p766_p9 = por %p145_p8, %p144_p6 }
   0xd   : > { %s764_s24 = scalar_select %p44_p7, %s678_s14, %s46_s21  }
   0xe   : > { %161 = sbr.rel (%p513_p10) target bundleno = 28 (0x1c), region = 16 }
  0x15   : > { %164 = sbr.rel (!%p55_p4) target bundleno = 28 (0x1c), region = 20  ;;  %s166_s26 = sand.u32 (%p55_p4), 1, %s678_s14  }
  0x16   : > { %s515_s27 = sshll.u32 (%p55_p4), %s686_s16, 3  ;;  %s514_s28 = sshll.u32 (%p55_p4), %s166_s26, 4 }
  0x17   : > { %s174_s4 = scalar_lea.vmem (%p55_p4), %s849_s0, %s515_s27  ;;  %s168_s5 = scalar_lea.vmem (%p55_p4), [#allocation2], %s514_s28 }
  0x18   : > { %v204_v0 = vld [vmem:[%s174_s4] sm:$0xff] (%p55_p4) }
  0x19   : > { %v206_v1 = vld [vmem:[%s174_s4 + $0x20] sm:$0xff] (%p55_p4)  ;;  %205 = vst [vmem:[%s168_s5] sm:$0xff] (%p55_p4), %v204_v0 }
  0x1a   : > { %207 = vst [vmem:[%s168_s5 + $0x8] sm:$0xff] (%p55_p4), %v206_v1 }
  0x1c PF: > { %p516_p11 = scmp.ge.s32.totalorder %s690_s17, 1  ;;  %p226_p12 = scmp.lt.s32.totalorder %s690_s17, 5 }
  0x1e   : > { %p227_p13 = pnand %p516_p11, %p226_p12 }
  0x1f   : > { %p265_p0 = scmp.lt.s32.totalorder (!%p227_p13), %s682_s15, 3  ;;  %s233_s6 = sand.u32 (!%p227_p13), 1, %s674_s13   ;;  %vm280_vm0 = vcmask (!%p227_p13), 261120   ;;  %v371_v10 = vlaneseq (!%p227_p13) }
  0x20   : > { %230 = sbr.rel (%p227_p13) target bundleno = 286 (0x11e), region = 66  ;;  %s517_s7 = sshll.u32 (!%p227_p13), %s233_s6, 4 }
  0x21   : > { %s235_s10 = scalar_lea.vmem (!%p227_p13), [#allocation2], %s517_s7  ;;  %v372_v11 = vshrl.u32 (!%p227_p13), %v371_v10, 7  ;;  %s263_s27 = scalar_lea.vmem (!%p227_p13), [#allocation3], %s517_s7 }
  0x22   : > { %v274_v2 = vld [vmem:[%s235_s10] sm:$0xff] (!%p227_p13)  ;;  %v275_v9 = vld [vmem:[%s235_s10 + $0x8] sm:$0xff] (!%p227_p13)  ;;  %s404_s28 = sshll.u32 (!%p227_p13), %s263_s27, 4  ;;  %s525_s29 = sshll.u32 (!%p227_p13), %s682_s15, 7  ;;  %s792_s28 = int_to_ptr.vmem [resolvable:$true] %s404_s28 }
  0x23   : > { %543 = vmatprep.mubr.msk.f32.mxu0 (!%p227_p13), %vm280_vm0, %v274_v2  ;;  %vm376_vm1 = vcmp.eq.s32.totalorder (!%p227_p13), %v372_v11, 1  ;;  %vm377_vm2 = vcmp.eq.s32.totalorder (!%p227_p13), %v372_v11, 3  ;;  %vm379_vm4 = vcmp.eq.s32.totalorder (!%p227_p13), %v372_v11, 5  ;;  %s797_s5 = scalar_lea.hbm (!%p227_p13), %s852_s3, %s525_s29  ;;  %s612_s7 = scalar_lea.vmem (!%p227_p13), %s792_s28, 256 }
  0x24   : > { %vm378_vm3 = vmor (!%p227_p13), %vm376_vm1, %vm377_vm2  ;;  %p613_p1 = scmp.ne.s32.totalorder (!%p227_p13), %s792_s28, %s612_s7 }
  0x25   : > { %vm380_vm5 = vmor (!%p227_p13), %vm378_vm3, %vm379_vm4 }
  0x26   : > { %p614_p2 = pnand (!%p227_p13), %p613_p1, %p755_p5 }
  0x27   : > { %s266_s8 = scalar_select %p265_p0, %s682_s15, 3 }
  0x28   : > { %s803_s15 = scalar_lea.sflag [#allocation4], %s233_s6  ;;  %p615_p3 = pneg %p614_p2 }
  0x29   : > { %s528_s9 = sshll.u32 %s266_s8, 5  ;;  %s272_s26 = scalar_lea.vmem %s851_s2, %s266_s8 }
  0x2a   : > { %s269_s19 = scalar_lea.vmem %s850_s1, %s528_s9  ;;  %v523_v12 = vld [vmem:[%s272_s26] ss:$0 sm:$0xff]  ;;  %s692_s8 = smov [#allocation3]  }
  0x2b   : > { %v276_v3 = vld [vmem:[%s269_s19] sm:$0xff]  ;;  %v277_v4 = vld [vmem:[%s269_s19 + $0x8] sm:$0xff]  ;;  %v278_v5 = vld [vmem:[%s269_s19 + $0x10] sm:$0xff]  ;;  %s616_s9 = sshll.u32 %s692_s8, 4  ;;  %s617_s9 = int_to_ptr.vmem [resolvable:$false] %s616_s9 }
  0x2c   : > { %v546_v6 = vpack.c.bf16 %v277_v4, %v276_v3  ;;  %v279_v7 = vld [vmem:[%s269_s19 + $0x18] sm:$0xff]  ;;  %s618_s10 = scalar_lea.vmem %s617_s9, 512  ;;  %p619_p4 = scmp.lt.s32.totalorder %s792_s28, %s617_s9 }
  0x2d   : > { %v550_v8 = vpack.c.bf16 %v279_v7, %v278_v5  ;;  %p620_p6 = scmp.lt.s32.totalorder %s618_s10, %s612_s7 }
  0x2e   : > { %547 = vmatprep.subr.bf16.mxu0 %v546_v6 }
  0x2f   : > { %549 = vmatpush3.bf16.msra.mxu0 %v546_v6  ;;  %p621_p7 = por %p620_p6, %p619_p4 }
  0x30   : > { %551 = vmatprep.subr.bf16.mxu0 %v550_v8 }
  0x31   : > { %p622_p8 = pnand %p621_p7, %p615_p3 }
  0x33   : > { %553 = vmatpush3.bf16.msra.mxu0 %v550_v8 }
  0x36   : > { %544 = vmatmul.mubr.msk.f32.vlgmr.msra.gmra.mrb[0].mxu0 %vm280_vm0, %v275_v9 }
 0x109   : > { %v545_v13 = vpop.f32.mrb[0].mxu0 }
 0x10a   : > { %v370_v14 = vadd.f32 %v545_v13, %v523_v12  ;;  %v353_v15 = vpop.f32.mrb[1].mxu0 }
 0x10b   : > { %v369_v16 = vadd.f32 %v523_v12, %v353_v15 }
 0x10c   : > { %v384_v17 = vsel %vm380_vm5, %v370_v14, %v275_v9 }
 0x10d   : > { %386 = vst.msk [vmem:[%s263_s27 + $0x8] sm:$0xff] %vm280_vm0, %v384_v17  ;;  %v383_v18 = vsel %vm380_vm5, %v369_v16, %v274_v2 }
 0x10e   : > { %385 = vst.msk [vmem:[%s263_s27] sm:$0xff] %vm280_vm0, %v383_v18 }
 0x10f   : > { %625 = shalt.err (!%p622_p8)
}
 0x110   : > { %s626_s6 = scalar_lea.hbm %s797_s5, 256  ;;  %s630_s19 = scalar_lea.hbm %s852_s3, 1024 }
 0x111   : > { %p627_p10 = scmp.ne.s32.totalorder %s797_s5, %s626_s6  ;;  %p631_p13 = scmp.lt.u32.totalorder %s797_s5, %s852_s3 }
 0x112   : > { %p632_p0 = scmp.lt.u32.totalorder %s630_s19, %s626_s6  ;;  %p634_p2 = scmp.lt.u32.totalorder %s626_s6, %s797_s5 }
 0x113   : > { %p628_p11 = pnand %p627_p10, %p755_p5 }
 0x114   : > { %p633_p1 = por %p632_p0, %p631_p13 }
 0x115   : > { %p629_p12 = pneg %p628_p11 }
 0x116   : > { %p635_p3 = por %p634_p2, %p633_p1 }
 0x118   : > { %p636_p4 = pnand %p635_p3, %p629_p12 }
 0x11a   : > { %639 = shalt.err (!%p636_p4)
}
 0x11b   : > { %s693_s26 = smov 128   ;;  %s694_s27 = smov 512  }
 0x11c   : > { %s695_s29 = smov 8  }
 0x11d   : > { %554 = dma.vmem_to_hbm [thread:$0]  (%p755_p5), %s792_s28, 256, %s797_s5, %s803_s15, %s693_s26, %s694_s27, %s695_s29  }
 0x11e PF: > { %p560_p6 = scmp.ge.s32.totalorder %s690_s17, 2  ;;  %s419_s30 = sand.u32 1, %s670_s12  }
 0x11f   : > { %s420_s4 = scalar_lea.sflag [#allocation4], %s419_s30 }
 0x120   : > { %p557_p7 = pnand %p560_p6, %p766_p9 }
 0x122   : > { %665 = dma.done.wait (!%p557_p7), %s420_s4, 256  }
 0x123   : > { %667 = vsyncadd (!%p557_p7), %s420_s4, 4294967040  ;;  %s16_s17 = sadd.s32 1, %s690_s17   ;;  %s855_s12 = smov %s674_s13 }
 0x124   : > { %p13_p8 = scmp.ge.s32.totalorder %s16_s17, 6   ;;  %s856_s13 = smov %s678_s14 }
 0x125   : > { %s857_s14 = smov %s764_s24  ;;  %s858_s15 = smov %s686_s16 }
 0x126   : > { %s859_s16 = smov %s861_s20  ;;  %15 = sbr.rel (!%p13_p8) target bundleno = 4 (0x4), region = 116 }
 0x12d   :  { %425 = vsyncpa [#allocation4], 1 }
 0x12e   :  { %427 = vsyncpa [#allocation4 + $0x1], 1 }

</bundles_post_ra>
